<compile_context>
chip_gen: v7x
topology: tpu7x:2x2x1
jax: 0.10.0
libtpu: 0.0.40
codegen_flags: <defaults>
</compile_context>

<pallas_src>
import functools

import jax
import jax.numpy as jnp
from jax.experimental import pallas as pl
from jax.experimental.pallas import tpu as pltpu


def _center_loss_kernel(labels_ref, x_ref, c_ref, loss_ref, acc_ref, *,
                        batch, num_classes):
    # labels_ref: (B,) i32 in SMEM (scalar prefetch; also drives the centers gather)
    # x_ref:      (1, 1, D) f32 in VMEM  -- row b of the features
    # c_ref:      (1, 1, D) f32 in VMEM  -- row labels[b] of the centers (gathered)
    # loss_ref:   (1, 1) f32 in SMEM     -- final loss (written on last step)
    # acc_ref:    (1,)   f32 in SMEM     -- running sum across the batch grid
    b = pl.program_id(0)

    @pl.when(b == 0)
    def _init():
        acc_ref[0] = jnp.float32(0.0)

    x = x_ref[...]  # (1, 1, D)
    c = c_ref[...]  # (1, 1, D)

    # ||x_b||^2 + ||c_{y_b}||^2 - 2 <x_b, c_{y_b}>   (same algebra as torch's addmm_)
    d = jnp.sum(x * x) + jnp.sum(c * c) - 2.0 * jnp.sum(x * c)
    acc_ref[0] += jnp.clip(d, 1e-12, 1.0e12)

    @pl.when(b == batch - 1)
    def _finalize():
        # Each of the B*(C-1) masked-out zeros of the full dist matrix would have
        # been clamped up to 1e-12 by torch; add that contribution exactly.
        correction = jnp.float32((num_classes - 1) * 1e-12)
        loss_ref[0, 0] = acc_ref[0] / jnp.float32(batch) + correction


def center_loss(x, centers, labels):
    """x: (B, D) f32, centers: (C, D) f32, labels: (B,) int -> scalar f32 loss."""
    B, D = x.shape
    C, Dc = centers.shape
    assert D == Dc
    assert labels.shape[0] == B, "features.size(0) is not equal to labels.size(0)"

    labels_i32 = labels.astype(jnp.int32)
    # Reshape so the last two dims of each block equal the full array dims
    # (keeps block shapes legal for any B / C, while the leading dim is gathered).
    x3 = x.astype(jnp.float32).reshape(B, 1, D)
    c3 = centers.astype(jnp.float32).reshape(C, 1, D)

    kernel = functools.partial(_center_loss_kernel, batch=B, num_classes=C)

    out = pl.pallas_call(
        kernel,
        out_shape=jax.ShapeDtypeStruct((1, 1), jnp.float32),
        grid_spec=pltpu.PrefetchScalarGridSpec(
            num_scalar_prefetch=1,          # labels -> SMEM, available to index_maps
            grid=(B,),
            in_specs=[
                # feature row b
                pl.BlockSpec((1, 1, D), lambda b, labels: (b, 0, 0)),
                # gathered center row labels[b]: only B rows of centers are DMA'd
                pl.BlockSpec((1, 1, D), lambda b, labels: (labels[b], 0, 0)),
            ],
            out_specs=pl.BlockSpec(memory_space=pltpu.SMEM),
            scratch_shapes=[pltpu.SMEM((1,), jnp.float32)],
        ),
        compiler_params=pltpu.CompilerParams(
            # shared SMEM accumulator across the batch axis -> sequential
            dimension_semantics=("arbitrary",)),
    )(labels_i32, x3, c3)
    return out[0, 0]


def center_loss_ref(x, centers, labels):
    """Pure-JAX reference mirroring the PyTorch forward exactly."""
    B = x.shape[0]
    C = centers.shape[0]
    distmat = (jnp.sum(x ** 2, axis=1, keepdims=True)
               + jnp.sum(centers ** 2, axis=1, keepdims=True).T
               - 2.0 * jnp.dot(x, centers.T, precision=jax.lax.Precision.HIGHEST))
    mask = labels[:, None] == jnp.arange(C, dtype=labels.dtype)[None, :]
    dist = distmat * mask.astype(jnp.float32)
    return jnp.sum(jnp.clip(dist, 1e-12, 1.0e12)) / B


if __name__ == "__main__":
    # Small shapes consistent with the module (num_classes, feat_dim) scaled down.
    batch = 8
    feat_dim = 256
    num_classes = 64

    key = jax.random.PRNGKey(0)
    k_centers, k_x, k_labels = jax.random.split(key, 3)

    # nn.Parameter(torch.randn(num_classes, feat_dim)) -> deterministic normal init
    centers = jax.random.normal(k_centers, (num_classes, feat_dim), dtype=jnp.float32)
    x = jax.random.normal(k_x, (batch, feat_dim), dtype=jnp.float32)
    labels = jax.random.randint(k_labels, (batch,), 0, num_classes, dtype=jnp.int32)

    loss = jax.block_until_ready(center_loss(x, centers, labels))
    ref = jax.block_until_ready(center_loss_ref(x, centers, labels))

    assert jnp.allclose(loss, ref, rtol=1e-5, atol=1e-4), (loss, ref)
    print("KERNEL_OK")
</pallas_src>

<mosaic_0001>
module attributes {stable_mosaic.version = 11 : i64} {
  func.func @_center_loss_kernel(%arg0: i32, %arg1: memref<8xi32, #tpu.memory_space<smem>>, %arg2: memref<1x1x256xf32, #tpu.memory_space<vmem>>, %arg3: memref<1x1x256xf32, #tpu.memory_space<vmem>>, %arg4: memref<1x1xf32, #tpu.memory_space<smem>>, %arg5: memref<1xf32, #tpu.memory_space<smem>>) attributes {dimension_semantics = [#tpu.dimension_semantics<arbitrary>], iteration_bounds = array<i64: 8>, scalar_prefetch = 1 : i64, scratch_operands = 1 : i64, tpu.core_type = #tpu.core_type<tc>, window_params = [{transform_indices = @transform_0, window_bounds = array<i64: 1, 1, 256>}, {transform_indices = @transform_1, window_bounds = array<i64: 1, 1, 256>}, {transform_indices = @transform_2, window_bounds = array<i64: 1, 1>}]} {
    %c0_i32 = arith.constant 0 : i32
    %0 = arith.cmpi eq, %arg0, %c0_i32 : i32
    %1 = arith.extui %0 : i1 to i32
    %c0_i32_0 = arith.constant 0 : i32
    %2 = arith.cmpi ne, %1, %c0_i32_0 : i32
    scf.if %2 {
      %cst_14 = arith.constant 0.000000e+00 : f32
      %c0_15 = arith.constant 0 : index
      %31 = memref.load %arg5[%c0_15] : memref<1xf32, #tpu.memory_space<smem>>
      memref.store %cst_14, %arg5[%c0_15] : memref<1xf32, #tpu.memory_space<smem>>
    } else {
    }
    %c0 = arith.constant 0 : index
    %c0_1 = arith.constant 0 : index
    %c0_2 = arith.constant 0 : index
    %3 = vector.load %arg2[%c0, %c0_1, %c0_2] : memref<1x1x256xf32, #tpu.memory_space<vmem>>, vector<1x1x256xf32>
    %c0_3 = arith.constant 0 : index
    %c0_4 = arith.constant 0 : index
    %c0_5 = arith.constant 0 : index
    %4 = vector.load %arg3[%c0_3, %c0_4, %c0_5] : memref<1x1x256xf32, #tpu.memory_space<vmem>>, vector<1x1x256xf32>
    %5 = arith.mulf %3, %3 : vector<1x1x256xf32>
    %6 = vector.shape_cast %5 : vector<1x1x256xf32> to vector<1x1x1x256xf32>
    %cst = arith.constant dense<0.000000e+00> : vector<1xf32>
    %7 = vector.multi_reduction <add>, %6, %cst [1, 2, 3] : vector<1x1x1x256xf32> to vector<1xf32>
    %8 = vector.shape_cast %7 : vector<1xf32> to vector<1x1x1x1xf32>
    %9 = vector.extract %8[0, 0, 0, 0] : f32 from vector<1x1x1x1xf32>
    %10 = arith.mulf %4, %4 : vector<1x1x256xf32>
    %11 = vector.shape_cast %10 : vector<1x1x256xf32> to vector<1x1x1x256xf32>
    %cst_6 = arith.constant dense<0.000000e+00> : vector<1xf32>
    %12 = vector.multi_reduction <add>, %11, %cst_6 [1, 2, 3] : vector<1x1x1x256xf32> to vector<1xf32>
    %13 = vector.shape_cast %12 : vector<1xf32> to vector<1x1x1x1xf32>
    %14 = vector.extract %13[0, 0, 0, 0] : f32 from vector<1x1x1x1xf32>
    %15 = arith.addf %9, %14 : f32
    %16 = arith.mulf %3, %4 : vector<1x1x256xf32>
    %17 = vector.shape_cast %16 : vector<1x1x256xf32> to vector<1x1x1x256xf32>
    %cst_7 = arith.constant dense<0.000000e+00> : vector<1xf32>
    %18 = vector.multi_reduction <add>, %17, %cst_7 [1, 2, 3] : vector<1x1x1x256xf32> to vector<1xf32>
    %19 = vector.shape_cast %18 : vector<1xf32> to vector<1x1x1x1xf32>
    %20 = vector.extract %19[0, 0, 0, 0] : f32 from vector<1x1x1x1xf32>
    %cst_8 = arith.constant 2.000000e+00 : f32
    %21 = arith.mulf %cst_8, %20 : f32
    %22 = arith.subf %15, %21 : f32
    %c0_9 = arith.constant 0 : index
    %23 = memref.load %arg5[%c0_9] : memref<1xf32, #tpu.memory_space<smem>>
    %cst_10 = arith.constant 9.99999996E-13 : f32
    %cst_11 = arith.constant 9.99999995E+11 : f32
    %24 = arith.maximumf %cst_10, %22 : f32
    %25 = arith.minimumf %cst_11, %24 : f32
    %26 = arith.addf %23, %25 : f32
    %c0_12 = arith.constant 0 : index
    %27 = memref.load %arg5[%c0_12] : memref<1xf32, #tpu.memory_space<smem>>
    memref.store %26, %arg5[%c0_12] : memref<1xf32, #tpu.memory_space<smem>>
    %c7_i32 = arith.constant 7 : i32
    %28 = arith.cmpi eq, %arg0, %c7_i32 : i32
    %29 = arith.extui %28 : i1 to i32
    %c0_i32_13 = arith.constant 0 : i32
    %30 = arith.cmpi ne, %29, %c0_i32_13 : i32
    scf.if %30 {
      %c0_14 = arith.constant 0 : index
      %31 = memref.load %arg5[%c0_14] : memref<1xf32, #tpu.memory_space<smem>>
      %cst_15 = arith.constant 8.000000e+00 : f32
      %32 = arith.divf %31, %cst_15 : f32
      %cst_16 = arith.constant 6.300000e-11 : f32
      %33 = arith.addf %32, %cst_16 : f32
      %c0_17 = arith.constant 0 : index
      %c0_18 = arith.constant 0 : index
      %34 = memref.load %arg4[%c0_17, %c0_18] : memref<1x1xf32, #tpu.memory_space<smem>>
      memref.store %33, %arg4[%c0_17, %c0_18] : memref<1x1xf32, #tpu.memory_space<smem>>
    } else {
    }
    return
  }
  func.func @transform_0(%arg0: i32, %arg1: memref<8xi32, #tpu.memory_space<smem>>) -> (i32, i32, i32) {
    %c0_i32 = arith.constant 0 : i32
    %c0_i32_0 = arith.constant 0 : i32
    %c0_i32_1 = arith.constant 0 : i32
    return %arg0, %c0_i32, %c0_i32_0 : i32, i32, i32
  }
  func.func @transform_1(%arg0: i32, %arg1: memref<8xi32, #tpu.memory_space<smem>>) -> (i32, i32, i32) {
    %0 = arith.index_cast %arg0 : i32 to index
    %1 = memref.load %arg1[%0] : memref<8xi32, #tpu.memory_space<smem>>
    %c0_i32 = arith.constant 0 : i32
    %c0_i32_0 = arith.constant 0 : i32
    %c0_i32_1 = arith.constant 0 : i32
    return %1, %c0_i32, %c0_i32_0 : i32, i32, i32
  }
  func.func @transform_2(%arg0: i32, %arg1: memref<8xi32, #tpu.memory_space<smem>>) -> (i32, i32) {
    %c0_i32 = arith.constant 0 : i32
    %c0_i32_0 = arith.constant 0 : i32
    %c0_i32_1 = arith.constant 0 : i32
    return %c0_i32, %c0_i32_0 : i32, i32
  }
}

</mosaic_0001>

<bundles_post_ra>
// kernel: tpu_custom_call.1
= control target key start
LH: loop header
LB: loop body
LE: loop exit
PB: predicated region body
PF: predicated region fallthrough
CT: control target
= control target key end

     0   :  { %s922_s0 = inlined_call_operand.hbm [shape: s32[8], index: 0, kind: input, shape index: {}]   ;;  %s923_s1 = inlined_call_operand.hbm [shape: f32[8,1,256], index: 1, kind: input, shape index: {}]   ;;  %s924_s2 = inlined_call_operand.hbm [shape: f32[64,1,256], index: 2, kind: input, shape index: {}]   ;;  %s925_s3 = inlined_call_operand.hbm [shape: f32[1,1], index: 3, kind: output, shape index: {}]  }
   0x1   :  { %s490_s14 = scalar_lea.hbm %s922_s0, 16 }
   0x2   :  { %p491_p0 = scmp.ne.s32.totalorder %s922_s0, %s490_s14  ;;  %p494_p1 = scmp.lt.u32.totalorder %s490_s14, %s922_s0 }
   0x4   :  { %p496_p2 = pnand %p494_p1, %p491_p0 }
   0x6   :  { %499 = shalt.err (!%p496_p2)  }
   0x7   :  { %s642_s19 = smov [#allocation4]  }
   0x8   :  { %9 = dma.hbm_to_smem %s922_s0, 16, %s642_s19, [#allocation3] }
   0x9   :  { %600 = dma.done.wait [#allocation3], 16 }
   0xa   :  { %601 = vsyncadd [#allocation3], 4294967280 }
   0xb   :  { %11 = sfence }
   0xc   :  { %12 = vsyncpa [#allocation6], 0 }
   0xd   :  { %14 = vsyncpa [#allocation6 + $0x1], 0 }
   0xe   :  { %15 = vsyncpa [#allocation9], 0 }
   0xf   :  { %17 = vsyncpa [#allocation9 + $0x1], 0 }
  0x10   :  { %18 = vsyncpa [#allocation7], 0  ;;  %s681_s22 = smov 0   ;;  %s683_s23 = smov 0  }
  0x11   :  { %s685_s24 = smov 0   ;;  %s687_s25 = smov 0  }
  0x12   :  { %s689_s26 = smov 0   ;;  %s691_s27 = smov 0  }
  0x13   :  { %s693_s0 = smov 0  }
  0x14 LB: > { %s375_s28 = sadd.s32 4294967295, %s640_s0   ;;  %s716_s29 = sadd.s32 1, %s640_s0   ;;  %s640_s0 = sphi %s693_s0, %s953_s0   ;;  %s636_s27 = sphi %s691_s27, %s952_s27   ;;  %s632_s26 = sphi %s689_s26, %s951_s26   ;;  %s628_s25 = sphi %s687_s25, %s950_s25   ;;  %s624_s24 = sphi %s685_s24, %s949_s24   ;;  %s620_s23 = sphi %s683_s23, %s948_s23   ;;  %s616_s22 = sphi %s681_s22, %s947_s22  }
  0x15   : > { %s28_s30 = ssub.s32 %s640_s0, %s716_s29  ;;  %s31_s4 = sadd.s32 1, %s636_s27 }
  0x16   : > { %p29_p3 = scmp.eq.s32.totalorder %s28_s30, 0  ;;  %p38_p4 = scmp.ne.s32.totalorder %s636_s27, %s632_s26 }
  0x17   : > { %p927_p5 = scmp.eq.s32.totalorder %s640_s0, 0  ;;  %p44_p6 = scmp.ne.s32.totalorder %s632_s26, %s628_s25 }
  0x18   : > { %s726_s5 = scalar_select %p29_p3, %s636_s27, %s31_s4  }
  0x19   : > { %p40_p7 = por %p927_p5, %p38_p4  ;;  %p732_p8 = scmp.eq.s32.totalorder %s375_s28, 0 }
  0x1a   : > { %s737_s7 = sld [smem:[#allocation4 + %s716_s29]]  ;;  %p926_p10 = scmp.lt.s32.totalorder %s640_s0, 8 }
  0x1b   : > { %s931_s6 = scalar_select %p732_p8, 1, 0 }
  0x1c   : > { %p741_p9 = por %p732_p8, %p44_p6  ;;  %s117_s9 = sand.u32 1, %s636_s27  }
  0x1d   : > { %s393_s10 = sshll.u32 %s640_s0, 5  ;;  %s378_s11 = sshll.u32 %s117_s9, 1 }
  0x1e   : > { %s932_s8 = scalar_select %p741_p9, 1, 0 }
  0x1f   : > { %s751_s14 = scalar_lea.hbm %s923_s1, %s393_s10  ;;  %s121_s15 = scalar_lea.vmem [#allocation5], %s378_s11 }
  0x20   : > { %s129_s16 = sshll.u32 %s121_s15, 4  ;;  %p755_p11 = pnand %p926_p10, %p40_p7  ;;  %s759_s16 = int_to_ptr.vmem [resolvable:$true] %s129_s16 }
  0x21   : > { %s118_s18 = scalar_lea.sflag [#allocation6], %s117_s9  ;;  %s500_s19 = scalar_lea.hbm %s751_s14, 32 }
  0x22   : > { %p501_p0 = scmp.ne.s32.totalorder %s751_s14, %s500_s19  ;;  %p502_p1 = pneg %p755_p11 }
  0x23   : > { %s505_s25 = scalar_lea.hbm %s923_s1, 256  ;;  %p506_p4 = scmp.lt.u32.totalorder %s751_s14, %s923_s1 }
  0x24   : > { %p503_p2 = pnand %p502_p1, %p501_p0  ;;  %p507_p6 = scmp.lt.u32.totalorder %s505_s25, %s500_s19 }
  0x25   : > { %p509_p10 = scmp.lt.u32.totalorder %s500_s19, %s751_s14 }
  0x26   : > { %p504_p3 = pneg %p503_p2  ;;  %p508_p7 = por %p507_p6, %p506_p4 }
  0x28   : > { %p510_p5 = por %p509_p10, %p508_p7 }
  0x2a   : > { %p511_p12 = pnand %p510_p5, %p504_p3 }
  0x2c   : > { %514 = shalt.err (!%p511_p12)
}
  0x2d   : > { %s515_s9 = scalar_lea.vmem %s759_s16, 32  ;;  %s643_s10 = smov [#allocation5]  }
  0x2e   : > { %p516_p0 = scmp.ne.s32.totalorder %s759_s16, %s515_s9  ;;  %s520_s11 = sshll.u32 %s643_s10, 4  ;;  %s521_s11 = int_to_ptr.vmem [resolvable:$false] %s520_s11 }
  0x2f   : > { %s522_s12 = scalar_lea.vmem %s521_s11, 64  ;;  %p523_p9 = scmp.lt.s32.totalorder %s759_s16, %s521_s11 }
  0x30   : > { %p518_p2 = pnand %p516_p0, %p502_p1  ;;  %p524_p4 = scmp.lt.s32.totalorder %s522_s12, %s515_s9 }
  0x32   : > { %p519_p13 = pneg %p518_p2  ;;  %p525_p6 = por %p524_p4, %p523_p9 }
  0x34   : > { %p526_p10 = pnand %p525_p6, %p519_p13 }
  0x36   : > { %529 = shalt.err (!%p526_p10)
}
  0x37   : > { %418 = dma.hbm_to_vmem [thread:$0]  (!%p755_p11), %s751_s14, 32, %s759_s16, %s118_s18  }
  0x38   : > { %p934_p5 = scmp.lt.s32.totalorder %s640_s0, 9  ;;  %p935_p9 = scmp.ge.s32.totalorder %s640_s0, 1 }
  0x39   : > { %s54_s15 = sld [smem:[#allocation4 + %s640_s0]]  ;;  %p66_p13 = scmp.ne.s32.totalorder %s624_s24, %s620_s23 }
  0x3a   : > { %p792_p12 = pnand %p935_p9, %p934_p5  ;;  %p72_p1 = scmp.ne.s32.totalorder %s620_s23, %s616_s22 }
  0x3b   : > { %s136_s17 = sand.u32 1, %s624_s24   ;;  %p937_p3 = scmp.eq.s32.totalorder %s640_s0, 0 }
  0x3c   : > { %p806_p0 = por %p72_p1, %p732_p8  ;;  %s59_s14 = sadd.s32 1, %s624_s24 }
  0x3d   : > { %p68_p7 = por %p66_p13, %p937_p3  ;;  %s381_s18 = sshll.u32 %s136_s17, 1 }
  0x3e   : > { %s938_s19 = scalar_select %p806_p0, 1, 0 }
  0x3f   : > { %s56_s16 = ssub.s32 %s54_s15, %s737_s7  ;;  %p939_p2 = scmp.lt.s32.totalorder %s640_s0, 8 }
  0x40   : > { %p57_p11 = scmp.eq.s32.totalorder %s56_s16, 0  ;;  %s140_s4 = scalar_lea.vmem [#allocation8], %s381_s18 }
  0x41   : > { %p814_p4 = pnand %p939_p2, %p68_p7  ;;  %p941_p6 = pmov %p939_p2 }
  0x42   : > { %s402_s22 = scalar_select %p68_p7, [#allocation4], [#allocation11] }
  0x43   : > { %s819_s21 = scalar_select %p57_p11, %s624_s24, %s59_s14  }
  0x44   : > { %s403_s25 = scalar_select %p68_p7, %s640_s0, 0 }
  0x45   : > { %s955_s22 = smov (!%p941_p6, %s402_s22), [#allocation12]  ;;  %p942_p10 = pmov %p939_p2 }
  0x46   : > { %s149_s7 = sshll.u32 %s140_s4, 4  ;;  %s137_s15 = scalar_lea.sflag [#allocation9], %s136_s17  ;;  %s826_s7 = int_to_ptr.vmem [resolvable:$true] %s149_s7 }
  0x47   : > { %s957_s25 = smov (!%p942_p10, %s403_s25), 0  ;;  %p532_p9 = pneg %p814_p4 }
  0x48   : > { %s141_s30 = sld [smem:[%s955_s22 + %s957_s25]]  ;;  %s535_s22 = scalar_lea.hbm %s924_s2, 2048 }
  0x4e   : > { %s394_s9 = sshll.u32 %s141_s30, 5 }
  0x4f   : > { %s831_s12 = scalar_lea.hbm %s924_s2, %s394_s9 }
  0x50   : > { %s530_s14 = scalar_lea.hbm %s831_s12, 32  ;;  %p536_p3 = scmp.lt.u32.totalorder %s831_s12, %s924_s2 }
  0x51   : > { %p531_p5 = scmp.ne.s32.totalorder %s831_s12, %s530_s14  ;;  %p537_p7 = scmp.lt.u32.totalorder %s535_s22, %s530_s14 }
  0x52   : > { %p539_p2 = scmp.lt.u32.totalorder %s530_s14, %s831_s12 }
  0x53   : > { %p533_p13 = pnand %p532_p9, %p531_p5  ;;  %p538_p11 = por %p537_p7, %p536_p3 }
  0x55   : > { %p534_p1 = pneg %p533_p13  ;;  %p540_p6 = por %p539_p2, %p538_p11 }
  0x57   : > { %p541_p10 = pnand %p540_p6, %p534_p1 }
  0x59   : > { %544 = shalt.err (!%p541_p10)
}
  0x5a   : > { %s545_s17 = scalar_lea.vmem %s826_s7, 32  ;;  %s644_s4 = smov [#allocation8]  }
  0x5b   : > { %p546_p5 = scmp.ne.s32.totalorder %s826_s7, %s545_s17  ;;  %s550_s9 = sshll.u32 %s644_s4, 4  ;;  %s551_s9 = int_to_ptr.vmem [resolvable:$false] %s550_s9 }
  0x5c   : > { %s552_s10 = scalar_lea.vmem %s551_s9, 64  ;;  %p553_p0 = scmp.lt.s32.totalorder %s826_s7, %s551_s9 }
  0x5d   : > { %p548_p13 = pnand %p546_p5, %p532_p9  ;;  %p554_p3 = scmp.lt.s32.totalorder %s552_s10, %s545_s17 }
  0x5f   : > { %p549_p8 = pneg %p548_p13  ;;  %p555_p7 = por %p554_p3, %p553_p0 }
  0x61   : > { %p556_p11 = pnand %p555_p7, %p549_p8 }
  0x63   : > { %559 = shalt.err (!%p556_p11)
}
  0x64   : > { %423 = dma.hbm_to_vmem [thread:$0]  (!%p814_p4), %s831_s12, 32, %s826_s7, %s137_s15  }
  0x65   : > { %158 = sbr.rel (%p792_p12) target bundleno = 352 (0x160), region = 28  ;;  %s160_s11 = sand.u32 (!%p792_p12), 1, %s632_s26  }
  0x66   : > { %s385_s14 = sshll.u32 (!%p792_p12), %s160_s11, 1  ;;  %s161_s16 = scalar_lea.sflag (!%p792_p12), [#allocation6], %s160_s11 }
  0x67   : > { %s164_s18 = scalar_lea.vmem (!%p792_p12), [#allocation5], %s385_s14  ;;  %p943_p9 = scmp.ne.s32.totalorder (!%p792_p12), %s932_s8, 0 }
  0x6c   : > { %603 = dma.done.wait (%p943_p9), %s161_s16, 32  }
  0x6d   : > { %605 = vsyncadd (%p943_p9), %s161_s16, 4294967264  ;;  %s169_s20 = sand.u32 1, %s620_s23   ;;  %p944_p8 = scmp.ne.s32.totalorder %s938_s19, 0 }
  0x6e   : > { %s386_s22 = sshll.u32 %s169_s20, 1  ;;  %s170_s25 = scalar_lea.sflag [#allocation9], %s169_s20 }
  0x6f   : > { %s173_s7 = scalar_lea.vmem [#allocation8], %s386_s22 }
  0x70   : > { %607 = dma.done.wait (%p944_p8), %s170_s25, 32  }
  0x71   : > { %609 = vsyncadd (%p944_p8), %s170_s25, 4294967264  ;;  %v205_v0 = vlaneseq  ;;  %v201_v4 = vld [vmem:[%s164_s18] sm:$0x3]  ;;  %v202_v5 = vld [vmem:[%s173_s7] sm:$0x3]  ;;  %vm215_vm0 = vcmask 1040384  }
  0x72   : > { %v253_v6 = vmul.f32 %v202_v5, %v201_v4  ;;  %v203_v7 = vmul.f32 %v201_v4, %v201_v4  ;;  %v228_v8 = vmul.f32 %v202_v5, %v202_v5  ;;  %s645_s8 = smov 0.0   ;;  %p945_p12 = scmp.ne.s32.totalorder %s931_s6, 0 }
  0x73   : > { %v206_v1 = vshrl.u32 %v205_v0, 7  ;;  %s646_s4 = smov 1e-12   ;;  %s647_s10 = smov 1e+12  }
  0x74   : > { %408 = sst [smem:[#allocation2]] (%p945_p12), %s645_s8  ;;  %p874_p0 = scmp.eq.s32.totalorder %s375_s28, 7 }
  0x75   : > { %v207_v2 = vsub.s32 0, %v206_v1  ;;  %v211_v3 = vsub.s32 1, %v206_v1  ;;  %s279_s19 = sld [smem:[#allocation2]]  ;;  %s560_s7 = scalar_lea.hbm %s925_s3, 16 }
  0x76   : > { %p561_p4 = scmp.ne.s32.totalorder %s925_s3, %s560_s7  ;;  %p566_p6 = scmp.lt.u32.totalorder %s560_s7, %s925_s3 }
  0x77   : > { %v258_v9 = vrot.slane %v253_v6, %v207_v2  ;;  %v262_v10 = vrot.slane %v253_v6, %v211_v3  ;;  %v208_v11 = vrot.slane %v203_v7, %v207_v2  ;;  %v212_v12 = vrot.slane %v203_v7, %v211_v3 }
  0x78   : > { %v233_v13 = vrot.slane %v228_v8, %v207_v2  ;;  %v237_v14 = vrot.slane %v228_v8, %v211_v3  ;;  %p562_p1 = pnand %p561_p4, %p874_p0 }
  0x79   : > { %v265_v15 = vsel %vm215_vm0, %v258_v9, 0.0  ;;  %v266_v16 = vsel %vm215_vm0, %v262_v10, 0.0  ;;  %v216_v17 = vsel %vm215_vm0, %v208_v11, 0.0  ;;  %v217_v18 = vsel %vm215_vm0, %v212_v12, 0.0 }
  0x7a   : > { %v267_v19 = vadd.f32 %v266_v16, %v265_v15  ;;  %v218_v20 = vadd.f32 %v217_v18, %v216_v17  ;;  %v240_v21 = vsel %vm215_vm0, %v233_v13, 0.0  ;;  %v241_v22 = vsel %vm215_vm0, %v237_v14, 0.0  ;;  %p563_p2 = pneg %p562_p1 }
  0x7b   : > { %v242_v23 = vadd.f32 %v241_v22, %v240_v21 }
  0x7c   : > { %268 = vadd.xlane.f32.xlu1 %v267_v19  ;;  %219 = vadd.xlane.f32.xlu0 %v218_v20  ;;  %p568_p10 = pnand %p566_p6, %p563_p2 }
  0x80   : > { %243 = vadd.xlane.f32.xlu0 %v242_v23 }
 0x109   : > { %v269_v24 = vpop.xlane.xlu1 %268  ;;  %v220_v25 = vpop.xlane.xlu0 %219 }
 0x10a   : > { %v270_v26 = vrot.slane %v269_v24, 4  ;;  %v221_v27 = vrot.slane %v220_v25, 4 }
 0x10c   : > { %v271_v28 = vadd.f32 %v270_v26, %v269_v24  ;;  %v222_v29 = vadd.f32 %v221_v27, %v220_v25 }
 0x10d   : > { %v244_v30 = vpop.xlane.xlu0 %243 }
 0x10e   : > { %v272_v31 = vrot.slane %v271_v28, 2  ;;  %v223_v32 = vrot.slane %v222_v29, 2  ;;  %v245_v33 = vrot.slane %v244_v30, 4 }
 0x110   : > { %v246_v34 = vadd.f32 %v245_v33, %v244_v30  ;;  %v224_v35 = vadd.f32 %v223_v32, %v222_v29  ;;  %v273_v36 = vadd.f32 %v272_v31, %v271_v28 }
 0x112   : > { %v247_v37 = vrot.slane %v246_v34, 2  ;;  %v225_v38 = vrot.slane %v224_v35, 1  ;;  %v274_v41 = vrot.slane %v273_v36, 1 }
 0x114   : > { %v248_v39 = vadd.f32 %v247_v37, %v246_v34  ;;  %v226_v40 = vadd.f32 %v225_v38, %v224_v35  ;;  %v275_v44 = vadd.f32 %v274_v41, %v273_v36 }
 0x116   : > { %395 = vpush %v226_v40  ;;  %v249_v42 = vrot.slane %v248_v39, 1 }
 0x118   : > { %v250_v43 = vadd.f32 %v249_v42, %v248_v39 }
 0x11a   : > { %397 = vpush %v250_v43 }
 0x11b   : > { %399 = vpush %v275_v44 }
 0x147   : > { %s396_s6 = spop %395 }
 0x14b   : > { %s398_s13 = spop %397 }
 0x14c   : > { %s252_s12 = sadd.f32 %s398_s13, %s396_s6  ;;  %s400_s15 = spop %399 }
 0x14d   : > { %s277_s30 = smul.f32 2.0, %s400_s15 }
 0x14f   : > { %s278_s17 = ssub.f32 %s252_s12, %s277_s30 }
 0x151   : > { %s280_s9 = smax.f32 %s646_s4, %s278_s17 }
 0x152   : > { %s281_s11 = smin.f32 %s647_s10, %s280_s9 }
 0x153   : > { %s282_s14 = sadd.f32 %s281_s11, %s279_s19 }
 0x155   : > { %284 = sst [smem:[#allocation2]] %s282_s14  ;;  %s292_s18 = smul.f32 0.125, %s282_s14 }
 0x157   : > { %s293_s20 = sadd.f32 6.3e-11, %s292_s18 }
 0x159   : > { %410 = sst [smem:[#allocation10]] (%p874_p0), %s293_s20 }
 0x15a   : > { %571 = shalt.err (!%p568_p10)
}
 0x15b   : > { %s648_s13 = smov [#allocation10]  }
 0x15c   : > { %412 = dma.smem_to_hbm (%p874_p0), %s648_s13, 16, %s925_s3, [#allocation7]  }
 0x15d   : > { %611 = dma.done.wait (%p874_p0), [#allocation7], 16  }
 0x15e   : > { %613 = vsyncadd (%p874_p0), [#allocation7], 4294967280 }
 0x15f   : > { %309 = sfence }
 0x160 PF: > { %p21_p5 = scmp.ge.s32.totalorder %s716_s29, 10   ;;  %s947_s22 = smov %s620_s23 }
 0x161   : > { %s948_s23 = smov %s624_s24  ;;  %s949_s24 = smov %s819_s21 }
 0x162   : > { %s950_s25 = smov %s632_s26  ;;  %s951_s26 = smov %s636_s27 }
 0x163   : > { %s952_s27 = smov %s726_s5  ;;  %s953_s0 = smov %s716_s29 }
 0x164   :  { %23 = sbr.rel (!%p21_p5) target bundleno = 20 (0x14), region = 89 }
 0x16b   :  { %315 = vsyncpa [#allocation6], 1 }
 0x16c   :  { %317 = vsyncpa [#allocation6 + $0x1], 1 }
 0x16d   :  { %318 = vsyncpa [#allocation9], 1 }
 0x16e   :  { %320 = vsyncpa [#allocation9 + $0x1], 1 }
 0x16f   :  { %321 = vsyncpa [#allocation7], 1 }
 0x170   :  { %323 = vsyncpa [#allocation7 + $0x1], 1 }

</bundles_post_ra>
